<compile_context>
chip_gen: v7x
topology: tpu7x:2x2x1
jax: 0.10.0
libtpu: 0.0.40
codegen_flags: <defaults>
</compile_context>

<pallas_src>
import functools

import jax
import jax.numpy as jnp
from jax.experimental import pallas as pl
from jax.experimental.pallas import tpu as pltpu


def _attn_kernel(xq_ref, xkv_ref, wqkv_ref, wo_ref, bo_ref, o_ref,
                 *, heads, dim_head):
    # xq_ref:  (1, TQ, D)   query tile of x
    # xkv_ref: (1, N,  D)   full sequence (for K/V)
    # wqkv_ref:(D, 3*INNER) bf16, columns ordered [Q | K | V], scale folded into Q
    # wo_ref:  (INNER, D)   bf16
    # bo_ref:  (1, D)       fp32
    inner = heads * dim_head
    tq = xq_ref.shape[1]
    n = xkv_ref.shape[1]

    xq = xq_ref[0].astype(jnp.bfloat16)            # (TQ, D)
    xkv = xkv_ref[0].astype(jnp.bfloat16)          # (N, D)

    # Fused projections: one lane-dense matmul for Q, one for K|V.
    q = jnp.dot(xq, wqkv_ref[:, :inner],
                preferred_element_type=jnp.float32)            # (TQ, INNER), scale included
    kv = jnp.dot(xkv, wqkv_ref[:, inner:],
                 preferred_element_type=jnp.float32)           # (N, 2*INNER)

    qh = q.reshape(tq, heads, dim_head).swapaxes(0, 1).astype(jnp.bfloat16)             # (H,TQ,DH)
    kh = kv[:, :inner].reshape(n, heads, dim_head).swapaxes(0, 1).astype(jnp.bfloat16)  # (H,N,DH)
    vh = kv[:, inner:].reshape(n, heads, dim_head).swapaxes(0, 1).astype(jnp.bfloat16)  # (H,N,DH)

    # All-head scores + numerically stable softmax statistics, fp32.
    s = jnp.einsum('hqd,hkd->hqk', qh, kh,
                   preferred_element_type=jnp.float32)          # (H, TQ, N)
    m = jnp.max(s, axis=-1, keepdims=True)
    p = jnp.exp(s - m)                                          # un-normalized probs, fp32
    l = jnp.sum(p, axis=-1, keepdims=True)                      # (H, TQ, 1)

    # PV first, then normalize the small (H, TQ, DH) result via EUP reciprocal.
    hv = jnp.einsum('hqk,hkd->hqd', p.astype(jnp.bfloat16), vh,
                    preferred_element_type=jnp.float32)         # (H, TQ, DH)
    hv = hv * pl.reciprocal(l, approx=True)

    # Fused output projection over all heads + bias epilogue (written once).
    hv = hv.swapaxes(0, 1).reshape(tq, inner).astype(jnp.bfloat16)   # (TQ, INNER)
    out = jnp.dot(hv, wo_ref[...], preferred_element_type=jnp.float32) + bo_ref[...]
    o_ref[0] = out.astype(o_ref.dtype)


def attention_forward(x, w_qkv, w_out, b_out, *, heads, dim_head, block_q=None):
    """Fused ViT attention forward.

    Args:
      x:     (B, N, D) activations.
      w_qkv: (3*H*DH, D) PyTorch `to_qkv` Linear weight (no bias).
      w_out: (D, H*DH)   PyTorch `to_out[0]` Linear weight.
      b_out: (D,)        `to_out[0]` bias.
      block_q: query tile size (multiple of 8; 128/256 at production scale).
    """
    B, N, D = x.shape
    inner = heads * dim_head
    scale = dim_head ** (-0.5)

    # ---- plain-JAX glue (runs once, outside the kernel) --------------------
    # PyTorch Linear computes y = x @ W.T; transpose once here, fold the
    # softmax scale into the Q columns (free at runtime), and hand the MXU
    # bf16 operands (fp32 accumulation happens inside the kernel).
    w = w_qkv.T.astype(jnp.float32)                  # (D, 3*inner), cols = [Q|K|V]
    w = w.at[:, :inner].multiply(scale)
    wqkv = w.astype(jnp.bfloat16)                    # (D, 3*inner)
    wo = w_out.T.astype(jnp.bfloat16)                # (inner, D)
    bo = b_out.reshape(1, D).astype(jnp.float32)

    tq = N if block_q is None else min(block_q, N)
    grid = (B, pl.cdiv(N, tq))

    kernel = functools.partial(_attn_kernel, heads=heads, dim_head=dim_head)
    return pl.pallas_call(
        kernel,
        out_shape=jax.ShapeDtypeStruct((B, N, D), x.dtype),
        grid=grid,
        in_specs=[
            # Query tile of x, and full-sequence x for K/V (same array, 2 views).
            pl.BlockSpec((1, tq, D), lambda b, qi: (b, qi, 0)),
            pl.BlockSpec((1, N, D), lambda b, qi: (b, 0, 0)),
            # Weights: constant block index -> resident in VMEM across the grid.
            pl.BlockSpec((D, 3 * inner), lambda b, qi: (0, 0)),
            pl.BlockSpec((inner, D), lambda b, qi: (0, 0)),
            pl.BlockSpec((1, D), lambda b, qi: (0, 0)),
        ],
        out_specs=pl.BlockSpec((1, tq, D), lambda b, qi: (b, qi, 0)),
        compiler_params=pltpu.CompilerParams(
            # Two parallel axes so both v7x TensorCores get work even at B=1.
            dimension_semantics=("parallel", "parallel")),
    )(x, x, wqkv, wo, bo)


def ref_attention(x, w_qkv, w_out, b_out, *, heads, dim_head):
    """Pure fp32 JAX reference matching the PyTorch module exactly."""
    B, N, D = x.shape
    inner = heads * dim_head
    scale = dim_head ** (-0.5)
    qkv = x @ w_qkv.T                                         # (B, N, 3*inner)
    q, k, v = jnp.split(qkv, 3, axis=-1)

    def to_heads(t):                                          # 'b n (h d) -> b h n d'
        return t.reshape(B, N, heads, dim_head).transpose(0, 2, 1, 3)

    q, k, v = map(to_heads, (q, k, v))
    s = jnp.einsum('bhid,bhjd->bhij', q, k) * scale
    a = jax.nn.softmax(s, axis=-1)
    o = jnp.einsum('bhij,bhjd->bhid', a, v)
    o = o.transpose(0, 2, 1, 3).reshape(B, N, inner)          # 'b h t d -> b t (h d)'
    return o @ w_out.T + b_out


if __name__ == "__main__":
    # Small shapes consistent with the module's forward (two query tiles so the
    # (batch, query-tile) grid is actually exercised).
    B, N, DIM = 2, 16, 32
    HEADS, DIM_HEAD = 4, 16
    INNER = HEADS * DIM_HEAD

    key = jax.random.PRNGKey(0)
    kx, kqkv, ko, kb = jax.random.split(key, 4)

    # PyTorch convention: Linear weight is (out_features, in_features).
    x = jax.random.normal(kx, (B, N, DIM), dtype=jnp.float32)
    w_qkv = jax.random.normal(kqkv, (3 * INNER, DIM), dtype=jnp.float32) * 0.05
    w_out = jax.random.normal(ko, (DIM, INNER), dtype=jnp.float32) * 0.05
    b_out = jax.random.normal(kb, (DIM,), dtype=jnp.float32) * 0.05

    out = attention_forward(x, w_qkv, w_out, b_out,
                            heads=HEADS, dim_head=DIM_HEAD, block_q=8)
    out = jax.block_until_ready(out)

    ref = ref_attention(x, w_qkv, w_out, b_out, heads=HEADS, dim_head=DIM_HEAD)
    assert out.shape == ref.shape == (B, N, DIM)
    # Kernel uses bf16 MXU operands (fp32 accumulation) and an approximate
    # reciprocal; the pure-fp32 reference therefore differs by ~1e-3.
    err = float(jnp.max(jnp.abs(out - ref)))
    assert jnp.allclose(out, ref, atol=1e-2, rtol=1e-2), f"max abs err {err}"

    print("KERNEL_OK")
</pallas_src>

<mosaic_0001>
module attributes {stable_mosaic.version = 11 : i64} {
  func.func @_attn_kernel(%arg0: i32, %arg1: i32, %arg2: memref<1x8x32xf32, #tpu.memory_space<vmem>>, %arg3: memref<1x16x32xf32, #tpu.memory_space<vmem>>, %arg4: memref<32x192xbf16, #tpu.memory_space<vmem>>, %arg5: memref<64x32xbf16, #tpu.memory_space<vmem>>, %arg6: memref<1x32xf32, #tpu.memory_space<vmem>>, %arg7: memref<1x8x32xf32, #tpu.memory_space<vmem>>) attributes {dimension_semantics = [#tpu.dimension_semantics<parallel>, #tpu.dimension_semantics<parallel>], iteration_bounds = array<i64: 2, 2>, scalar_prefetch = 0 : i64, scratch_operands = 0 : i64, tpu.core_type = #tpu.core_type<tc>, window_params = [{transform_indices = @transform_0, window_bounds = array<i64: 1, 8, 32>}, {transform_indices = @transform_1, window_bounds = array<i64: 1, 16, 32>}, {pipeline_mode = #tpu.pipeline_mode<synchronous>, transform_indices = @transform_2, window_bounds = array<i64: 32, 192>}, {pipeline_mode = #tpu.pipeline_mode<synchronous>, transform_indices = @transform_3, window_bounds = array<i64: 64, 32>}, {pipeline_mode = #tpu.pipeline_mode<synchronous>, transform_indices = @transform_4, window_bounds = array<i64: 1, 32>}, {transform_indices = @transform_5, window_bounds = array<i64: 1, 8, 32>}]} {
    %c0 = arith.constant 0 : index
    %c0_0 = arith.constant 0 : index
    %c0_1 = arith.constant 0 : index
    %0 = vector.load %arg2[%c0, %c0_0, %c0_1] : memref<1x8x32xf32, #tpu.memory_space<vmem>>, vector<1x8x32xf32>
    %1 = vector.shape_cast %0 : vector<1x8x32xf32> to vector<8x32xf32>
    %2 = arith.truncf %1 : vector<8x32xf32> to vector<8x32xbf16>
    %c0_2 = arith.constant 0 : index
    %c0_3 = arith.constant 0 : index
    %c0_4 = arith.constant 0 : index
    %3 = vector.load %arg3[%c0_2, %c0_3, %c0_4] : memref<1x16x32xf32, #tpu.memory_space<vmem>>, vector<1x16x32xf32>
    %4 = vector.shape_cast %3 : vector<1x16x32xf32> to vector<16x32xf32>
    %5 = arith.truncf %4 : vector<16x32xf32> to vector<16x32xbf16>
    %c0_5 = arith.constant 0 : index
    %c0_6 = arith.constant 0 : index
    %6 = vector.load %arg4[%c0_5, %c0_6] : memref<32x192xbf16, #tpu.memory_space<vmem>>, vector<32x64xbf16>
    %cst = arith.constant dense<0.000000e+00> : vector<8x64xf32>
    %7 = tpu.matmul %2, %6, %cst {dimension_numbers = #tpu.dot_dimension_numbers<[1], [0], [0], [1], [0, 0, 1, 1], [], []>} : vector<8x32xbf16>, vector<32x64xbf16>, vector<8x64xf32> -> vector<8x64xf32>
    %c0_7 = arith.constant 0 : index
    %c64 = arith.constant 64 : index
    %8 = vector.load %arg4[%c0_7, %c64] : memref<32x192xbf16, #tpu.memory_space<vmem>>, vector<32x128xbf16>
    %cst_8 = arith.constant dense<0.000000e+00> : vector<16x128xf32>
    %9 = tpu.matmul %5, %8, %cst_8 {dimension_numbers = #tpu.dot_dimension_numbers<[1], [0], [0], [1], [0, 0, 1, 1], [], []>} : vector<16x32xbf16>, vector<32x128xbf16>, vector<16x128xf32> -> vector<16x128xf32>
    %10 = vector.shape_cast %7 : vector<8x64xf32> to vector<8x4x16xf32>
    %11 = tpu.transpose %10, [1, 0, 2] : vector<8x4x16xf32> -> vector<4x8x16xf32>
    %12 = arith.truncf %11 : vector<4x8x16xf32> to vector<4x8x16xbf16>
    %13 = vector.extract_strided_slice %9 {offsets = [0, 0], sizes = [16, 64], strides = [1, 1]} : vector<16x128xf32> to vector<16x64xf32>
    %14 = vector.shape_cast %13 : vector<16x64xf32> to vector<16x4x16xf32>
    %15 = tpu.transpose %14, [1, 0, 2] : vector<16x4x16xf32> -> vector<4x16x16xf32>
    %16 = arith.truncf %15 : vector<4x16x16xf32> to vector<4x16x16xbf16>
    %17 = vector.extract_strided_slice %9 {offsets = [0, 64], sizes = [16, 64], strides = [1, 1]} : vector<16x128xf32> to vector<16x64xf32>
    %18 = vector.shape_cast %17 : vector<16x64xf32> to vector<16x4x16xf32>
    %19 = tpu.transpose %18, [1, 0, 2] : vector<16x4x16xf32> -> vector<4x16x16xf32>
    %20 = arith.truncf %19 : vector<4x16x16xf32> to vector<4x16x16xbf16>
    "tpu.trace_start"() <{level = 10 : i32, message = "hqd,hkd->hqk"}> : () -> ()
    %cst_9 = arith.constant dense<0.000000e+00> : vector<4x8x16xf32>
    %21 = tpu.matmul %12, %16, %cst_9 {dimension_numbers = #tpu.dot_dimension_numbers<[2], [2], [1], [1], [0, 0, 0, 1, 1, 1], [0], [0]>} : vector<4x8x16xbf16>, vector<4x16x16xbf16>, vector<4x8x16xf32> -> vector<4x8x16xf32>
    "tpu.trace_stop"() : () -> ()
    %cst_10 = arith.constant dense<0xFF800000> : vector<4x8xf32>
    %22 = vector.multi_reduction <maximumf>, %21, %cst_10 [2] : vector<4x8x16xf32> to vector<4x8xf32>
    %23 = vector.shape_cast %22 : vector<4x8xf32> to vector<4x8x1xf32>
    %24 = vector.broadcast %23 : vector<4x8x1xf32> to vector<4x8x16xf32>
    %25 = arith.subf %21, %24 : vector<4x8x16xf32>
    %26 = math.exp %25 : vector<4x8x16xf32>
    %cst_11 = arith.constant dense<0.000000e+00> : vector<4x8xf32>
    %27 = vector.multi_reduction <add>, %26, %cst_11 [2] : vector<4x8x16xf32> to vector<4x8xf32>
    %28 = vector.shape_cast %27 : vector<4x8xf32> to vector<4x8x1xf32>
    %29 = arith.truncf %26 : vector<4x8x16xf32> to vector<4x8x16xbf16>
    "tpu.trace_start"() <{level = 10 : i32, message = "hqk,hkd->hqd"}> : () -> ()
    %cst_12 = arith.constant dense<0.000000e+00> : vector<4x8x16xf32>
    %30 = tpu.matmul %29, %20, %cst_12 {dimension_numbers = #tpu.dot_dimension_numbers<[2], [1], [1], [2], [0, 0, 0, 1, 1, 2], [0], [0]>} : vector<4x8x16xbf16>, vector<4x16x16xbf16>, vector<4x8x16xf32> -> vector<4x8x16xf32>
    "tpu.trace_stop"() : () -> ()
    %31 = tpu.reciprocal %28 {approx = true} : vector<4x8x1xf32> -> vector<4x8x1xf32>
    %32 = vector.broadcast %31 : vector<4x8x1xf32> to vector<4x8x16xf32>
    %33 = arith.mulf %30, %32 : vector<4x8x16xf32>
    %34 = tpu.transpose %33, [1, 0, 2] : vector<4x8x16xf32> -> vector<8x4x16xf32>
    %35 = vector.shape_cast %34 : vector<8x4x16xf32> to vector<8x64xf32>
    %36 = arith.truncf %35 : vector<8x64xf32> to vector<8x64xbf16>
    %c0_13 = arith.constant 0 : index
    %c0_14 = arith.constant 0 : index
    %37 = vector.load %arg5[%c0_13, %c0_14] : memref<64x32xbf16, #tpu.memory_space<vmem>>, vector<64x32xbf16>
    %cst_15 = arith.constant dense<0.000000e+00> : vector<8x32xf32>
    %38 = tpu.matmul %36, %37, %cst_15 {dimension_numbers = #tpu.dot_dimension_numbers<[1], [0], [0], [1], [0, 0, 1, 1], [], []>} : vector<8x64xbf16>, vector<64x32xbf16>, vector<8x32xf32> -> vector<8x32xf32>
    %c0_16 = arith.constant 0 : index
    %c0_17 = arith.constant 0 : index
    %39 = vector.load %arg6[%c0_16, %c0_17] : memref<1x32xf32, #tpu.memory_space<vmem>>, vector<1x32xf32>
    %40 = vector.broadcast %39 : vector<1x32xf32> to vector<8x32xf32>
    %41 = arith.addf %38, %40 : vector<8x32xf32>
    %c0_18 = arith.constant 0 : index
    %c0_19 = arith.constant 0 : index
    %c0_20 = arith.constant 0 : index
    %42 = vector.load %arg7[%c0_18, %c0_19, %c0_20] : memref<1x8x32xf32, #tpu.memory_space<vmem>>, vector<1x8x32xf32>
    %43 = vector.shape_cast %42 : vector<1x8x32xf32> to vector<8x32xf32>
    %44 = vector.shape_cast %41 : vector<8x32xf32> to vector<1x8x32xf32>
    tpu.vector_store %arg7[%c0_18, %c0_19, %c0_20], %44 {strides = array<i32>} : memref<1x8x32xf32, #tpu.memory_space<vmem>>, vector<1x8x32xf32>,
    return
  }
  func.func @transform_0(%arg0: i32, %arg1: i32) -> (i32, i32, i32) {
    %c0_i32 = arith.constant 0 : i32
    %c0_i32_0 = arith.constant 0 : i32
    return %arg0, %arg1, %c0_i32 : i32, i32, i32
  }
  func.func @transform_1(%arg0: i32, %arg1: i32) -> (i32, i32, i32) {
    %c0_i32 = arith.constant 0 : i32
    %c0_i32_0 = arith.constant 0 : i32
    %c0_i32_1 = arith.constant 0 : i32
    return %arg0, %c0_i32, %c0_i32_0 : i32, i32, i32
  }
  func.func @transform_2(%arg0: i32, %arg1: i32) -> (i32, i32) {
    %c0_i32 = arith.constant 0 : i32
    %c0_i32_0 = arith.constant 0 : i32
    %c0_i32_1 = arith.constant 0 : i32
    return %c0_i32, %c0_i32_0 : i32, i32
  }
  func.func @transform_3(%arg0: i32, %arg1: i32) -> (i32, i32) {
    %c0_i32 = arith.constant 0 : i32
    %c0_i32_0 = arith.constant 0 : i32
    %c0_i32_1 = arith.constant 0 : i32
    return %c0_i32, %c0_i32_0 : i32, i32
  }
  func.func @transform_4(%arg0: i32, %arg1: i32) -> (i32, i32) {
    %c0_i32 = arith.constant 0 : i32
    %c0_i32_0 = arith.constant 0 : i32
    %c0_i32_1 = arith.constant 0 : i32
    return %c0_i32, %c0_i32_0 : i32, i32
  }
  func.func @transform_5(%arg0: i32, %arg1: i32) -> (i32, i32, i32) {
    %c0_i32 = arith.constant 0 : i32
    %c0_i32_0 = arith.constant 0 : i32
    return %arg0, %arg1, %c0_i32 : i32, i32, i32
  }
}

</mosaic_0001>

<bundles_post_ra>
// kernel: tpu_custom_call.1
= control target key start
LH: loop header
LB: loop body
LE: loop exit
PB: predicated region body
PF: predicated region fallthrough
CT: control target
= control target key end

     0   :  { %s3003_s0 = inlined_call_operand.vmem [shape: f32[2,16,32], index: 0, kind: input, shape index: {}]   ;;  %s3004_s1 = inlined_call_operand.hbm [shape: f32[2,16,32], index: 1, kind: input, shape index: {}]   ;;  %s3005_s2 = inlined_call_operand.hbm [shape: bf16[32,192], index: 2, kind: input, shape index: {}]   ;;  %s3006_s3 = inlined_call_operand.vmem [shape: bf16[64,32], index: 3, kind: input, shape index: {}]   ;;  %s3007_s4 = inlined_call_operand.vmem [shape: f32[1,32], index: 4, kind: input, shape index: {}]   ;;  %s3008_s5 = inlined_call_operand.hbm [shape: f32[2,16,32], index: 5, kind: output, shape index: {}]  }
   0x1   :  { %3024 = sst [smem:[#allocation17_spill]] %s3005_s2 }
   0x2   :  { %3025 = sst [smem:[#allocation18_spill]] %s3008_s5 }
   0x3   :  { %10 = vsyncpa [#allocation3], 0 }
   0x4   :  { %12 = vsyncpa [#allocation3 + $0x1], 0 }
   0x5   :  { %13 = vsyncpa [#allocation6], 0 }
   0x6   :  { %14 = vsyncpa [#allocation4], 0 }
   0x7   :  { %16 = vsyncpa [#allocation4 + $0x1], 0  ;;  %s2504_s18 = smov 0   ;;  %s2506_s19 = smov 0  }
   0x8   :  { %s2508_s20 = smov 0   ;;  %s2510_s21 = smov 0  }
   0x9   :  { %s2512_s22 = smov 0   ;;  %s2514_s23 = smov 0  }
   0xa   :  { %s2516_s24 = smov 0   ;;  %s2518_s25 = smov 0  }
   0xb   :  { %s2520_s26 = smov 0   ;;  %s2522_s27 = smov 0  }
   0xc   :  { %s2524_s28 = smov 0  }
   0xd LB: > { %3026 = sst [smem:[#allocation11_spill]] %s2416_s18  ;;  %s1961_s29 = sadd.s32 4294967295, %s2456_s28   ;;  %s2456_s28 = sphi %s2524_s28, %s22_s28   ;;  %s2452_s27 = sphi %s2522_s27, %s3064_s27   ;;  %s2448_s26 = sphi %s2520_s26, %s3063_s26   ;;  %s2444_s25 = sphi %s2518_s25, %s3062_s25   ;;  %s2440_s24 = sphi %s2516_s24, %s3053_s24   ;;  %s2436_s23 = sphi %s2514_s23, %s3061_s23   ;;  %s2432_s22 = sphi %s2512_s22, %s3060_s22   ;;  %s2428_s21 = sphi %s2510_s21, %s3059_s21   ;;  %s2424_s20 = sphi %s2508_s20, %s3058_s20   ;;  %s2420_s19 = sphi %s2506_s19, %s3057_s19   ;;  %s2416_s18 = sphi %s2504_s18, %s3056_s18  }
   0xe   : > { %3027 = sst [smem:[#allocation12_spill]] %s2448_s26  ;;  %s1962_s30 = sadd.s32 4294967294, %s2456_s28  }
   0xf   : > { %p82_p0 = scmp.ne.s32.totalorder %s2432_s22, %s2428_s21  ;;  %p2560_p1 = scmp.eq.s32.totalorder %s1961_s29, 0 }
  0x10   : > { %p170_p2 = scmp.ne.s32.totalorder %s2424_s20, %s2420_s19  ;;  %p171_p4 = scmp.eq.s32.totalorder %s1961_s29, 3 }
  0x11   : > { %s3028_s6 = scalar_select %p2560_p1, 1, 0 }
  0x12   : > { %p2569_p3 = por %p2560_p1, %p82_p0  ;;  %p176_p5 = scmp.ne.s32.totalorder %s2420_s19, %s2416_s18 }
  0x13   : > { %p177_p6 = scmp.eq.s32.totalorder %s1962_s30, 3  ;;  %p2575_p7 = por %p171_p4, %p170_p2 }
  0x14   : > { %s3029_s8 = scalar_select %p2569_p3, 1, 0 }
  0x15   : > { %s3030_s9 = scalar_select %p2575_p7, 1, 0 }
  0x16   : > { %p1963_p8 = scmp.ge.s32.totalorder %s2456_s28, 1  ;;  %p2580_p9 = por %p177_p6, %p176_p5 }
  0x17   : > { %3031 = sst [smem:[#allocation13_spill]] %s3030_s9  ;;  %p184_p10 = scmp.lt.s32.totalorder %s2456_s28, 5 }
  0x18   : > { %s3032_s10 = scalar_select %p2580_p9, 1, 0 }
  0x19   : > { %p2585_p11 = pnand %p1963_p8, %p184_p10  ;;  %s2458_s12 = smov [#allocation5]  }
  0x1a   : > { %3033 = sst [smem:[#allocation14_spill]] %s3032_s10  ;;  %s196_s13 = sshll.u32 %s2458_s12, 4  ;;  %s197_s13 = int_to_ptr.vmem [resolvable:$true] %s196_s13 }
  0x1b   : > { %s3034_s11 = scalar_select %p2585_p11, 1, 0 }
  0x1c   : > { %p2126_p12 = pneg %p2585_p11  ;;  %s3036_s2 = sld [smem:[#allocation17_spill]] }
  0x1e   : > { %p2593_p13 = pnand %p2126_p12, %p2560_p1 }
  0x20   : > { %p2274_p2 = pneg %p2593_p13 }
  0x22   : > { %s2272_s17 = scalar_lea.hbm %s3036_s2, 512 }
  0x23   : > { %p2273_p0 = scmp.ne.s32.totalorder %s3036_s2, %s2272_s17  ;;  %p2279_p6 = scmp.lt.u32.totalorder %s2272_s17, %s3036_s2 }
  0x25   : > { %p2275_p4 = pnand %p2274_p2, %p2273_p0 }
  0x27   : > { %p2276_p5 = pneg %p2275_p4 }
  0x29   : > { %p2281_p8 = pnand %p2279_p6, %p2276_p5 }
  0x2b   : > { %2284 = shalt.err (!%p2281_p8)
}
  0x2c   : > { %s2285_s7 = scalar_lea.vmem %s197_s13, 512  ;;  %p2293_p7 = scmp.lt.s32.totalorder %s197_s13, %s197_s13 }
  0x2d   : > { %p2286_p10 = scmp.ne.s32.totalorder %s197_s13, %s2285_s7  ;;  %p2294_p1 = scmp.lt.s32.totalorder %s2285_s7, %s2285_s7 }
  0x2f   : > { %p2288_p12 = pnand %p2286_p10, %p2274_p2  ;;  %p2295_p3 = por %p2294_p1, %p2293_p7 }
  0x31   : > { %p2289_p9 = pneg %p2288_p12 }
  0x33   : > { %p2296_p11 = pnand %p2295_p3, %p2289_p9 }
  0x35   : > { %2299 = shalt.err (!%p2296_p11)
}
  0x36   : > { %s3014_s15 = smov 128   ;;  %s3015_s16 = smov 8  }
  0x37   : > { %2129 = dma.hbm_to_vmem [thread:$0]  (!%p2593_p13), %s3036_s2, 512, %s197_s13, [#allocation6], %s3014_s15, %s3014_s15, %s3015_s16  }
  0x38   : > { %s31_s21 = sadd.s32 1, %s2448_s26  ;;  %s34_s29 = sadd.s32 1, %s2452_s27 }
  0x39   : > { %p32_p1 = scmp.ge.s32.totalorder %s31_s21, 2  ;;  %s69_s30 = sadd.s32 1, %s2436_s23 }
  0x3a   : > { %p76_p3 = scmp.ne.s32.totalorder %s2436_s23, %s2432_s22  ;;  %p77_p7 = scmp.eq.s32.totalorder %s2456_s28, 0 }
  0x3b   : > { %s3066_s21 = smov (%p32_p1, %s31_s21), 0  ;;  %s3068_s29 = smov (!%p32_p1, %s34_s29), %s2452_s27 }
  0x3c   : > { %3037 = sst [smem:[#allocation15_spill]] %s3066_s21  ;;  %s156_s14 = ssub.s32 %s2448_s26, %s3066_s21 }
  0x3d   : > { %p36_p9 = scmp.ge.s32.totalorder %s3068_s29, 2  ;;  %p2139_p11 = scmp.lt.s32.totalorder %s2456_s28, 4 }
  0x3e   : > { %p2628_p13 = por %p77_p7, %p76_p3  ;;  %s227_s12 = sand.u32 1, %s2436_s23  }
  0x3f   : > { %s3070_s29 = smov (%p36_p9, %s3068_s29), 0  ;;  %s1966_s7 = sshll.u32 %s227_s12, 4 }
  0x40   : > { %3039 = sst [smem:[#allocation16_spill]] %s3070_s29  ;;  %s66_s17 = ssub.s32 %s2452_s27, %s3070_s29 }
  0x41   : > { %p67_p0 = scmp.eq.s32.totalorder %s66_s17, 0  ;;  %s157_s15 = sor.u32 %s156_s14, %s66_s17 }
  0x42   : > { %p158_p2 = scmp.eq.s32.totalorder %s157_s15, 0  ;;  %s2014_s16 = sshll.u32 %s2452_s27, 8 }
  0x43   : > { %s2639_s2 = scalar_select %p67_p0, %s2436_s23, %s69_s30  }
  0x44   : > { %s3040_s21 = sadd.s32 1, %s2424_s20  ;;  %s2649_s5 = scalar_lea.hbm %s3004_s1, %s2014_s16 }
  0x45   : > { %s2644_s26 = scalar_select %p158_p2, %s2424_s20, %s3040_s21  }
  0x46   : > { %s231_s9 = scalar_lea.vmem [#allocation2], %s1966_s7  ;;  %p2657_p4 = pnand %p2139_p11, %p2628_p13 }
  0x47   : > { %s238_s29 = sshll.u32 %s231_s9, 4  ;;  %s2661_s21 = scalar_lea.sflag [#allocation3], %s227_s12  ;;  %s2651_s29 = int_to_ptr.vmem [resolvable:$true] %s238_s29 }
  0x48   : > { %s2300_s18 = scalar_lea.hbm %s2649_s5, 256  ;;  %p2302_p6 = pneg %p2657_p4 }
  0x49   : > { %p2301_p5 = scmp.ne.s32.totalorder %s2649_s5, %s2300_s18  ;;  %s2305_s16 = scalar_lea.hbm %s3004_s1, 512 }
  0x4a   : > { %p2306_p12 = scmp.lt.u32.totalorder %s2649_s5, %s3004_s1  ;;  %p2307_p1 = scmp.lt.u32.totalorder %s2305_s16, %s2300_s18 }
  0x4b   : > { %p2303_p8 = pnand %p2302_p6, %p2301_p5  ;;  %p2309_p7 = scmp.lt.u32.totalorder %s2300_s18, %s2649_s5 }
  0x4c   : > { %p2308_p3 = por %p2307_p1, %p2306_p12 }
  0x4d   : > { %p2304_p10 = pneg %p2303_p8 }
  0x4e   : > { %p2310_p9 = por %p2309_p7, %p2308_p3 }
  0x50   : > { %p2311_p11 = pnand %p2310_p9, %p2304_p10 }
  0x52   : > { %2314 = shalt.err (!%p2311_p11)
}
  0x53   : > { %s2315_s13 = scalar_lea.vmem %s2651_s29, 256  ;;  %s2461_s12 = smov [#allocation2]  }
  0x54   : > { %p2316_p13 = scmp.ne.s32.totalorder %s2651_s29, %s2315_s13  ;;  %s2320_s7 = sshll.u32 %s2461_s12, 4  ;;  %s2321_s7 = int_to_ptr.vmem [resolvable:$false] %s2320_s7 }
  0x55   : > { %s2322_s17 = scalar_lea.vmem %s2321_s7, 512  ;;  %p2323_p5 = scmp.lt.s32.totalorder %s2651_s29, %s2321_s7 }
  0x56   : > { %p2318_p0 = pnand %p2316_p13, %p2302_p6  ;;  %p2324_p8 = scmp.lt.s32.totalorder %s2322_s17, %s2315_s13 }
  0x58   : > { %p2319_p2 = pneg %p2318_p0  ;;  %p2325_p12 = por %p2324_p8, %p2323_p5 }
  0x5a   : > { %p2326_p1 = pnand %p2325_p12, %p2319_p2 }
  0x5c   : > { %2329 = shalt.err (!%p2326_p1)
}
  0x5d   : > { %s3042_s18 = smov 8   ;;  %s3043_s9 = smov 128  }
  0x5e   : > { %2133 = dma.hbm_to_vmem [thread:$0]  (!%p2657_p4), %s2649_s5, 256, %s2651_s29, %s2661_s21, %s3043_s9, %s3043_s9, %s3042_s18  }
  0x5f   : > { %p3044_p6 = scmp.ne.s32.totalorder %s3034_s11, 0 }
  0x60   : > { %s252_s10 = sand.u32 (!%p3044_p6), 1, %s2432_s22   ;;  %p3045_p10 = scmp.ne.s32.totalorder (!%p3044_p6), %s3029_s8, 0 }
  0x61   : > { %250 = sbr.rel (%p3044_p6) target bundleno = 1616 (0x650), region = 40  ;;  %s2695_s16 = sshll.u32 (!%p3044_p6), %s252_s10, 4 }
  0x62   : > { %s253_s30 = scalar_lea.sflag (!%p3044_p6), [#allocation3], %s252_s10  ;;  %s256_s14 = scalar_lea.vmem (!%p3044_p6), [#allocation2], %s2695_s16 }
  0x68   : > { %2403 = dma.done.wait (%p3045_p10), %s253_s30, 256  }
  0x69   : > { %2405 = vsyncadd (%p3045_p10), %s253_s30, 4294967040  ;;  %p3046_p3 = scmp.ne.s32.totalorder %s3028_s6, 0 }
  0x6b   : > { %2407 = dma.done.wait (%p3046_p3), [#allocation6], 512  }
  0x6c   : > { %2409 = vsyncadd (%p3046_p3), [#allocation6], 4294966784  ;;  %p295_p4 = scmp.lt.s32.totalorder %s2444_s25, 1  ;;  %v2462_v0 = vmov 0.0   ;;  %vm2463_vm0 = vmmov 0   ;;  %p297_p7 = scmp.lt.s32.totalorder %s2440_s24, 1  ;;  %v461_v28 = vlaneseq }
  0x6d   : > { %2042 = vmatprep.subr.bf16.mxu1 %v2462_v0  ;;  %2046 = vmatprep.mubr.msk.bf16.mxu1 %vm2463_vm0, %v2462_v0  ;;  %v2244_v1 = vld [vmem:[#allocation5 + $0x10] ss:$8 sps:$4 sm:$0xff]   ;;  %v2246_v2 = vld [vmem:[#allocation5 + $0x14] ss:$8 sps:$4 sm:$0xff]   ;;  %s2464_s15 = smov 64   ;;  %vm325_vm1 = vcmask 261120  }
  0x6e   : > { %s296_s5 = scalar_select %p295_p4, %s2444_s25, 1  ;;  %2058 = vmatprep.subr.bf16.mxu0 %v2462_v0  ;;  %2060 = vmatprep.mubr.msk.bf16.mxu0 %vm2463_vm0, %v2462_v0  ;;  %v2247_v3 = vld [vmem:[#allocation5] ss:$8 sps:$4 sm:$0xff]   ;;  %v2249_v5 = vld [vmem:[#allocation5 + $0x4] ss:$8 sps:$4 sm:$0xff]   ;;  %vm397_vm2 = vcmask 523264  }
  0x6f   : > { %s298_s6 = scalar_select %p297_p7, %s2440_s24, 1  ;;  %393 = vrot.lane.b32.xlu1 %v2244_v1, %s2464_s15  ;;  %v2250_v4 = vld [vmem:[#allocation5] ss:$8 sps:$4 sm:$0xff]   ;;  %389 = vrot.lane.b32.xlu0 %v2247_v3, %s2464_s15  ;;  %v2251_v6 = vld [vmem:[#allocation5 + $0x10] ss:$8 sps:$4 sm:$0xff]   ;;  %v462_v34 = vshrl.u32 %v461_v28, 7 }
  0x70   : > { %s1973_s8 = sshll.u32 %s296_s5, 1  ;;  %2043 = vmatpush3.bf16.msra.mxu1 %v2250_v4  ;;  %v306_v14 = vld [vmem:[%s256_s14] sm:$0xff]  ;;  %v307_v15 = vld [vmem:[%s256_s14 + $0x8] sm:$0xff]  ;;  %s2465_s7 = smov 112   ;;  %v2468_v26 = vmov 1983009808  }
  0x71   : > { %s300_s11 = sadd.s32 %s1973_s8, %s298_s6  ;;  %2044 = vmatprep.subr.bf16.mxu1 %v2462_v0  ;;  %v308_v17 = vpack.c.bf16 %v307_v15, %v306_v14  ;;  %s2466_s17 = smov 96   ;;  %v459_v27 = vunpack.c.l.s4 %v2468_v26  ;;  %v2469_v30 = vmov 1934713408   ;;  %vm1192_vm3 = vcmask 130048  }
  0x72   : > { %s1974_s29 = sshll.u32 %s300_s11, 3  ;;  %s2467_s18 = smov 80   ;;  %v491_v31 = vunpack.c.l.s4 %v2469_v30  ;;  %vm1747_vm4 = vcmask 392192  }
  0x73   : > { %s302_s12 = scalar_lea.vmem %s3003_s0, %s1974_s29  ;;  %395 = vrot.lane.b32.xlu1 %v2246_v2, %s2464_s15  ;;  %391 = vrot.lane.b32.xlu0 %v2249_v5, %s2464_s15  ;;  %v460_v33 = vunpack.c.0.s8 %v459_v27  ;;  %s2470_s11 = smov 32  }
  0x74   : > { %v304_v7 = vld [vmem:[%s302_s12] sm:$0xff]  ;;  %2045 = vmatpush3.bf16.msra.mxu1 %v2251_v6  ;;  %v492_v36 = vunpack.c.0.s8 %v491_v31  ;;  %s2471_s29 = smov 16   ;;  %s292_s21 = sand.u32 1, %s2420_s19  }
  0x75   : > { %v305_v8 = vpack.c.bf16 %v304_v7, %v304_v7  ;;  %2050 = vmatprep.subr.bf16.mxu1 %v2462_v0  ;;  %v2749_v37 = vsub.s32 %v460_v33, %v462_v34  ;;  %s1972_s13 = sshll.u32 %s292_s21, 3  ;;  %s2010_s12 = sshll.u32 %s2444_s25, 1 }
  0x76   : > { %v2754_v42 = vsub.s32 %v492_v36, %v462_v34  ;;  %s3047_s9 = sld [smem:[#allocation13_spill]]  ;;  %s294_s16 = scalar_lea.vmem [#allocation7], %s1972_s13 }
  0x77   : > { %2047 = vmatmul.mubr.msk.bf16.vlgmr.msra.gmra.mrb[0].mxu1 %vm325_vm1, %v305_v8  ;;  %s1850_s30 = sshll.u32 %s294_s16, 4  ;;  %s3048_s6 = sld [smem:[#allocation18_spill]]  ;;  %s2942_s30 = int_to_ptr.vmem [resolvable:$true] %s1850_s30 }
  0x78   : > { %2054 = vmatprep.mubr.msk.bf16.mxu1 %vm2463_vm0, %v2462_v0  ;;  %s2330_s25 = scalar_lea.vmem %s2942_s30, 128 }
  0x79   : > { %p2331_p9 = scmp.ne.s32.totalorder %s2942_s30, %s2330_s25 }
  0x7c   : > { %p3049_p11 = scmp.ne.s32.totalorder %s3047_s9, 0 }
  0x7e   : > { %p2332_p13 = pnand %p2331_p9, %p3049_p11 }
  0x80   : > { %p2333_p0 = pneg %p2332_p13 }
  0xe1   : > { %v394_v9 = vpop.permute.xlu1 %393  ;;  %v390_v10 = vpop.permute.xlu0 %389 }
  0xe5   : > { %v392_v11 = vpop.permute.xlu0 %391  ;;  %v396_v13 = vpop.permute.xlu1 %395 }
  0xe6   : > { %v398_v12 = vsel %vm397_vm2, %v390_v10, %v392_v11  ;;  %v399_v16 = vsel %vm397_vm2, %v394_v9, %v396_v13 }
  0xe7   : > { %2051 = vmatpush3.bf16.msra.mxu1 %v398_v12 }
  0xe8   : > { %2052 = vmatprep.subr.bf16.mxu1 %v2462_v0 }
  0xeb   : > { %2053 = vmatpush3.bf16.msra.mxu1 %v399_v16 }
  0xec   : > { %2064 = vmatprep.subr.bf16.mxu1 %v2462_v0 }
  0xee   : > { %2055 = vmatmul.mubr.msk.bf16.vlgmr.msra.gmra.mrb[4].mxu1 %vm325_vm1, %v308_v17 }
  0xef   : > { %2066 = vmatprep.mubr.msk.bf16.mxu1 %vm2463_vm0, %v2462_v0 }
 0x14a   : > { %v2739_v18 = vpop.f32.mrb[0].mxu1 }
 0x14b   : > { %v2048_v19 = vpop.f32.mrb[1].mxu1 }
 0x14c   : > { %v366_v20 = vpop.f32.mrb[2].mxu1 }
 0x14d   : > { %v2049_v21 = vpop.f32.mrb[3].mxu1 }
 0x1c1   : > { %v439_v22 = vpop.f32.mrb[4].mxu1 }
 0x1c2   : > { %598 = vrot.lane.b32.xlu0 %v439_v22, %s2465_s7  ;;  %v2056_v23 = vpop.f32.mrb[5].mxu1 }
 0x1c3   : > { %v442_v24 = vpop.f32.mrb[6].mxu1 }
 0x1c4   : > { %600 = vrot.lane.b32.xlu1 %v442_v24, %s2465_s7  ;;  %v2057_v25 = vpop.f32.mrb[7].mxu1 }
 0x1c6   : > { %604 = vrot.lane.b32.xlu0 %v439_v22, %s2466_s17 }
 0x1c8   : > { %606 = vrot.lane.b32.xlu1 %v442_v24, %s2466_s17 }
 0x1ca   : > { %610 = vrot.lane.b32.xlu0 %v439_v22, %s2467_s18 }
 0x1cc   : > { %612 = vrot.lane.b32.xlu1 %v442_v24, %s2467_s18 }
 0x1ce   : > { %447 = vrot.lane.b32.xlu0 %v2739_v18, %s2465_s7  ;;  %s1846_s7 = sadd.s32 %s2440_s24, %s2010_s12  ;;  %s1835_s24 = scalar_lea.sflag [#allocation4], %s292_s21 }
 0x1cf   : > { %s2011_s10 = sshll.u32 %s1846_s7, 7 }
 0x1d0   : > { %450 = vrot.lane.b32.xlu1 %v2739_v18, %s2466_s17  ;;  %s2940_s8 = scalar_lea.hbm %s3048_s6, %s2011_s10 }
 0x1d2   : > { %453 = vrot.lane.b32.xlu0 %v2739_v18, %s2467_s18 }
 0x1d4   : > { %894 = vrot.lane.b32.xlu1 %v442_v24, %s2464_s15 }
 0x1d6   : > { %892 = vrot.lane.b32.xlu0 %v439_v22, %s2464_s15 }
 0x234   : > { %v599_v29 = vpop.permute.xlu0 %598 }
 0x235   : > { %896 = vrot.lane.b32.xlu1 %v599_v29, %s2464_s15 }
 0x236   : > { %v601_v32 = vpop.permute.xlu1 %600 }
 0x237   : > { %898 = vrot.lane.b32.xlu0 %v601_v32, %s2464_s15 }
 0x238   : > { %v605_v35 = vpop.permute.xlu0 %604 }
 0x239   : > { %900 = vrot.lane.b32.xlu1 %v605_v35, %s2464_s15  ;;  %v616_v38 = vcombine.low %v439_v22, %v605_v35  ;;  %v617_v39 = vcombine.high %v439_v22, %v605_v35 }
 0x23a   : > { %v607_v40 = vpop.permute.xlu1 %606 }
 0x23b   : > { %902 = vrot.lane.b32.xlu0 %v607_v40, %s2464_s15  ;;  %v624_v45 = vrot.slane %v616_v38, %v2749_v37  ;;  %v631_v46 = vrot.slane %v617_v39, %v2749_v37  ;;  %v684_v47 = vcombine.low %v442_v24, %v607_v40  ;;  %v685_v48 = vcombine.high %v442_v24, %v607_v40 }
 0x23c   : > { %v2752_v41 = vpop.permute.xlu0 %610 }
 0x23d   : > { %v632_v43 = vcombine.low %v599_v29, %v2752_v41  ;;  %v633_v44 = vcombine.high %v599_v29, %v2752_v41  ;;  %v692_v59 = vrot.slane %v684_v47, %v2749_v37  ;;  %v699_v60 = vrot.slane %v685_v48, %v2749_v37 }
 0x23e   : > { %v2760_v49 = vpop.permute.xlu1 %612 }
 0x23f   : > { %v640_v50 = vrot.slane %v632_v43, %v2749_v37  ;;  %v647_v51 = vrot.slane %v633_v44, %v2749_v37  ;;  %v700_v52 = vcombine.low %v601_v32, %v2760_v49  ;;  %v701_v53 = vcombine.high %v601_v32, %v2760_v49 }
 0x240   : > { %v448_v54 = vpop.permute.xlu0 %447 }
 0x241   : > { %v648_v55 = vcombine.low %v624_v45, %v640_v50  ;;  %v649_v56 = vcombine.high %v624_v45, %v640_v50  ;;  %v664_v57 = vcombine.low %v631_v46, %v647_v51  ;;  %v665_v58 = vcombine.high %v631_v46, %v647_v51 }
 0x242   : > { %v708_v61 = vrot.slane %v700_v52, %v2749_v37  ;;  %v715_v62 = vrot.slane %v701_v53, %v2749_v37  ;;  %v451_v8 = vpop.permute.xlu1 %450 }
 0x243   : > { %v656_v63 = vrot.slane %v648_v55, %v2754_v42  ;;  %v663_v1 = vrot.slane %v649_v56, %v2754_v42  ;;  %v672_v2 = vrot.slane %v664_v57, %v2754_v42  ;;  %v679_v3 = vrot.slane %v665_v58, %v2754_v42 }
 0x244   : > { %v716_v4 = vcombine.low %v692_v59, %v708_v61  ;;  %v717_v5 = vcombine.high %v692_v59, %v708_v61  ;;  %v732_v6 = vcombine.low %v699_v60, %v715_v62  ;;  %v733_v7 = vcombine.high %v699_v60, %v715_v62  ;;  %v454_v9 = vpop.permute.xlu0 %453 }
 0x245   : > { %v752_v10 = vcombine.low %v656_v63, %v663_v1  ;;  %v1985_v11 = vcombine.high %v656_v63, %v663_v1  ;;  %v768_v12 = vcombine.low %v672_v2, %v679_v3  ;;  %v1986_v13 = vcombine.high %v672_v2, %v679_v3 }
 0x246   : > { %v724_v14 = vrot.slane %v716_v4, %v2754_v42  ;;  %v731_v15 = vrot.slane %v717_v5, %v2754_v42  ;;  %v740_v16 = vrot.slane %v732_v6, %v2754_v42  ;;  %v747_v17 = vrot.slane %v733_v7, %v2754_v42 }
 0x247   : > { %v456_v19 = vcombine.low %v2739_v18, %v451_v8  ;;  %v457_v20 = vcombine.high %v2739_v18, %v451_v8  ;;  %v472_v21 = vcombine.low %v448_v54, %v454_v9  ;;  %v473_v22 = vcombine.high %v448_v54, %v454_v9 }
 0x248   : > { %v820_v23 = vcombine.low %v724_v14, %v731_v15  ;;  %v1987_v24 = vcombine.high %v724_v14, %v731_v15  ;;  %v836_v25 = vcombine.low %v740_v16, %v747_v17  ;;  %v1988_v26 = vcombine.high %v740_v16, %v747_v17 }
 0x249   : > { %v464_v27 = vrot.slane %v456_v19, %v2749_v37  ;;  %v471_v28 = vrot.slane %v457_v20, %v2749_v37  ;;  %v480_v29 = vrot.slane %v472_v21, %v2749_v37  ;;  %v487_v30 = vrot.slane %v473_v22, %v2749_v37 }
 0x24a   : > { %v759_v31 = vrot.slane %v752_v10, %v2749_v37  ;;  %v767_v32 = vrot.slane %v1985_v11, %v2749_v37  ;;  %v775_v18 = vrot.slane %v768_v12, %v2749_v37  ;;  %v783_v33 = vrot.slane %v1986_v13, %v2749_v37 }
 0x24b   : > { %v488_v34 = vcombine.low %v464_v27, %v480_v29  ;;  %v489_v35 = vcombine.high %v464_v27, %v480_v29  ;;  %v504_v36 = vcombine.low %v471_v28, %v487_v30  ;;  %v505_v38 = vcombine.high %v471_v28, %v487_v30 }
 0x24c   : > { %v784_v39 = vcombine.low %v759_v31, %v767_v32  ;;  %v800_v40 = vcombine.low %v775_v18, %v783_v33  ;;  %v827_v43 = vrot.slane %v820_v23, %v2749_v37  ;;  %v835_v44 = vrot.slane %v1987_v24, %v2749_v37 }
 0x24d   : > { %v496_v45 = vrot.slane %v488_v34, %v2754_v42  ;;  %v503_v46 = vrot.slane %v489_v35, %v2754_v42  ;;  %v512_v47 = vrot.slane %v504_v36, %v2754_v42  ;;  %v519_v48 = vrot.slane %v505_v38, %v2754_v42 }
 0x24e   : > { %v843_v50 = vrot.slane %v836_v25, %v2749_v37  ;;  %v851_v51 = vrot.slane %v1988_v26, %v2749_v37  ;;  %v792_v56 = vrot.slane %v784_v39, %v2754_v42  ;;  %v808_v57 = vrot.slane %v800_v40, %v2754_v42 }
 0x24f   : > { %v524_v52 = vcombine.low %v496_v45, %v503_v46  ;;  %v1983_v53 = vcombine.high %v496_v45, %v503_v46  ;;  %v540_v54 = vcombine.low %v512_v47, %v519_v48  ;;  %v1984_v55 = vcombine.high %v512_v47, %v519_v48 }
 0x250   : > { %v852_v58 = vcombine.low %v827_v43, %v835_v44  ;;  %v868_v59 = vcombine.low %v843_v50, %v851_v51  ;;  %v785_v3 = vcombine.high %v759_v31, %v767_v32  ;;  %v801_v4 = vcombine.high %v775_v18, %v783_v33 }
 0x251   : > { %v531_v60 = vrot.slane %v524_v52, %v2749_v37  ;;  %v539_v61 = vrot.slane %v1983_v53, %v2749_v37  ;;  %v547_v62 = vrot.slane %v540_v54, %v2749_v37  ;;  %v555_v63 = vrot.slane %v1984_v55, %v2749_v37 }
 0x252   : > { %v860_v1 = vrot.slane %v852_v58, %v2754_v42  ;;  %v876_v2 = vrot.slane %v868_v59, %v2754_v42  ;;  %v816_v7 = vcombine.low %v792_v56, %v808_v57  ;;  %v817_v9 = vcombine.high %v792_v56, %v808_v57 }
 0x253   : > { %v556_v5 = vcombine.low %v531_v60, %v539_v61  ;;  %v572_v6 = vcombine.low %v547_v62, %v555_v63  ;;  %v799_v11 = vrot.slane %v785_v3, %v2754_v42  ;;  %v815_v12 = vrot.slane %v801_v4, %v2754_v42  ;;  %v895_v4 = vpop.permute.xlu1 %894 }
 0x254   : > { %v884_v8 = vcombine.low %v860_v1, %v876_v2  ;;  %v885_v10 = vcombine.high %v860_v1, %v876_v2  ;;  %v853_v13 = vcombine.high %v827_v43, %v835_v44  ;;  %v869_v14 = vcombine.high %v843_v50, %v851_v51 }
 0x255   : > { %v564_v17 = vrot.slane %v556_v5, %v2754_v42  ;;  %v580_v19 = vrot.slane %v572_v6, %v2754_v42  ;;  %v557_v22 = vcombine.high %v531_v60, %v539_v61  ;;  %v573_v23 = vcombine.high %v547_v62, %v555_v63  ;;  %v893_v5 = vpop.permute.xlu0 %892 }
 0x256   : > { %v888_v15 = vpack.c.bf16 %v884_v8, %v816_v7  ;;  %v889_v16 = vpack.c.bf16 %v885_v10, %v817_v9  ;;  %v867_v20 = vrot.slane %v853_v13, %v2754_v42  ;;  %v883_v21 = vrot.slane %v869_v14, %v2754_v42 }
 0x257   : > { %v818_v26 = vcombine.low %v799_v11, %v815_v12  ;;  %v819_v28 = vcombine.high %v799_v11, %v815_v12  ;;  %v588_v29 = vcombine.low %v564_v17, %v580_v19  ;;  %v589_v30 = vcombine.high %v564_v17, %v580_v19 }
 0x258   : > { %v1197_v24 = vsel %vm1192_vm3, %v888_v15, 0  ;;  %v1243_v25 = vsel %vm1192_vm3, %v889_v16, 0  ;;  %v886_v27 = vcombine.low %v867_v20, %v883_v21  ;;  %v887_v31 = vcombine.high %v867_v20, %v883_v21 }
 0x259   : > { %2059 = vmatpush3.bf16.xpose.msra.mxu0 %v1197_v24  ;;  %2065 = vmatpush3.bf16.xpose.msra.mxu1 %v1243_v25  ;;  %v592_v33 = vpack.c.bf16 %v588_v29, %v588_v29  ;;  %v593_v34 = vpack.c.bf16 %v589_v30, %v589_v30  ;;  %v571_v35 = vrot.slane %v557_v22, %v2754_v42 }
 0x25a   : > { %2070 = vmatprep.subr.bf16.mxu0 %v2462_v0  ;;  %2076 = vmatprep.subr.bf16.mxu1 %v2462_v0  ;;  %v890_v32 = vpack.c.bf16 %v886_v27, %v818_v26  ;;  %v891_v18 = vpack.c.bf16 %v887_v31, %v819_v28  ;;  %v587_v36 = vrot.slane %v573_v23, %v2754_v42 }
 0x25c   : > { %v1289_v38 = vsel %vm1192_vm3, %v890_v32, 0  ;;  %v1335_v39 = vsel %vm1192_vm3, %v891_v18, 0  ;;  %v590_v40 = vcombine.low %v571_v35, %v587_v36  ;;  %v591_v43 = vcombine.high %v571_v35, %v587_v36 }
 0x25e   : > { %v594_v44 = vpack.c.bf16 %v590_v40, %v590_v40  ;;  %v595_v45 = vpack.c.bf16 %v591_v43, %v591_v43 }
 0x260   : > { %2061 = vmatmul.mubr.msk.bf16.vlgmr.msra.gmra.mrb[0].mxu0 %vm1192_vm3, %v592_v33  ;;  %2067 = vmatmul.mubr.msk.bf16.vlgmr.msra.gmra.mrb[8].mxu1 %vm1192_vm3, %v593_v34 }
 0x261   : > { %2071 = vmatpush3.bf16.xpose.msra.mxu0 %v1289_v38  ;;  %2077 = vmatpush3.bf16.xpose.msra.mxu1 %v1335_v39 }
 0x262   : > { %2072 = vmatprep.mubr.msk.bf16.mxu0 %vm2463_vm0, %v2462_v0  ;;  %2078 = vmatprep.mubr.msk.bf16.mxu1 %vm2463_vm0, %v2462_v0 }
 0x263   : > { %2082 = vmatprep.subr.bf16.mxu0 %v2462_v0  ;;  %2088 = vmatprep.subr.bf16.mxu1 %v2462_v0 }
 0x268   : > { %2073 = vmatmul.mubr.msk.bf16.vlgmr.msra.gmra.mrb[4].mxu0 %vm1192_vm3, %v594_v44  ;;  %2079 = vmatmul.mubr.msk.bf16.vlgmr.msra.gmra.mrb[12].mxu1 %vm1192_vm3, %v595_v45 }
 0x269   : > { %2084 = vmatprep.mubr.msk.bf16.mxu0 %vm2463_vm0, %v2462_v0  ;;  %2090 = vmatprep.mubr.msk.bf16.mxu1 %vm2463_vm0, %v2462_v0 }
 0x2a7   : > { %v897_v6 = vpop.permute.xlu1 %896 }
 0x2a9   : > { %v899_v7 = vpop.permute.xlu0 %898 }
 0x2ab   : > { %v901_v8 = vpop.permute.xlu1 %900 }
 0x2ac   : > { %v916_v13 = vcombine.low %v893_v5, %v901_v8 }
 0x2ad   : > { %v903_v9 = vpop.permute.xlu0 %902 }
 0x2ae   : > { %v984_v16 = vcombine.low %v895_v4, %v903_v9  ;;  %v985_v17 = vcombine.high %v895_v4, %v903_v9  ;;  %v924_v24 = vrot.slane %v916_v13, %v2749_v37 }
 0x2b0   : > { %v992_v30 = vrot.slane %v984_v16, %v2749_v37  ;;  %v999_v31 = vrot.slane %v985_v17, %v2749_v37 }
 0x333   : > { %v1233_v46 = vpop.f32.mrb[0].mxu0  ;;  %v1279_v47 = vpop.f32.mrb[8].mxu1 }
 0x334   : > { %v2062_v48 = vpop.f32.mrb[1].mxu0  ;;  %v2068_v50 = vpop.f32.mrb[9].mxu1  ;;  %v1377_v51 = vsel %vm1192_vm3, %v1233_v46, -inf  ;;  %v1380_v52 = vsel %vm1192_vm3, %v1279_v47, -inf }
 0x335   : > { %1378 = vmax.xlane.f32.xlu1 %v1377_v51  ;;  %v1236_v53 = vpop.f32.mrb[2].mxu0  ;;  %1381 = vmax.xlane.f32.xlu0 %v1380_v52  ;;  %v1282_v54 = vpop.f32.mrb[10].mxu1 }
 0x336   : > { %v2063_v55 = vpop.f32.mrb[3].mxu0  ;;  %v2069_v56 = vpop.f32.mrb[11].mxu1 }
 0x33b   : > { %v2834_v57 = vpop.f32.mrb[4].mxu0  ;;  %v2836_v58 = vpop.f32.mrb[12].mxu1 }
 0x33c   : > { %v2074_v59 = vpop.f32.mrb[5].mxu0  ;;  %v2080_v60 = vpop.f32.mrb[13].mxu1  ;;  %v1383_v2 = vsel %vm1192_vm3, %v2834_v57, -inf  ;;  %v1386_v3 = vsel %vm1192_vm3, %v2836_v58, -inf }
 0x33d   : > { %v1328_v61 = vpop.f32.mrb[6].mxu0  ;;  %v1374_v62 = vpop.f32.mrb[14].mxu1 }
 0x33e   : > { %v2075_v63 = vpop.f32.mrb[7].mxu0  ;;  %v2081_v1 = vpop.f32.mrb[15].mxu1 }
 0x346   : > { %904 = vrot.lane.b32.xlu1 %v2752_v41, %s2464_s15 }
 0x34b   : > { %906 = vrot.lane.b32.xlu0 %v2760_v49, %s2464_s15  ;;  %v917_v49 = vcombine.high %v893_v5, %v901_v8  ;;  %s2472_s15 = smov 48  }
 0x34d   : > { %v931_v26 = vrot.slane %v917_v49, %v2749_v37 }
 0x36a   : > { %1384 = vmax.xlane.f32.xlu1 %v1383_v2  ;;  %1387 = vmax.xlane.f32.xlu0 %v1386_v3 }
 0x3c2   : > { %v1379_v10 = vpop.xlane.xlu1 %1378  ;;  %v1382_v11 = vpop.xlane.xlu0 %1381 }
 0x3c3   : > { %v1389_v41 = vsub.f32 %v1233_v46, %v1379_v10  ;;  %v1390_v12 = vsub.f32 %v1279_v47, %v1382_v11 }
 0x3c5   : > { %v1393_v14 = vmul.f32 1.442695, %v1389_v41  ;;  %v1395_v15 = vmul.f32 1.442695, %v1390_v12 }
 0x3c6   : > { %v905_v19 = vpop.permute.xlu1 %904  ;;  %v907_v20 = vpop.permute.xlu0 %906 }
 0x3c7   : > { %2256 = vpow2.f32 %v1393_v14  ;;  %v932_v21 = vcombine.low %v897_v6, %v905_v19  ;;  %v933_v22 = vcombine.high %v897_v6, %v905_v19  ;;  %v1000_v23 = vcombine.low %v899_v7, %v907_v20 }
 0x3c8   : > { %2258 = vpow2.f32 %v1395_v15  ;;  %v1001_v25 = vcombine.high %v899_v7, %v907_v20 }
 0x3c9   : > { %v940_v27 = vrot.slane %v932_v21, %v2749_v37  ;;  %v947_v28 = vrot.slane %v933_v22, %v2749_v37  ;;  %v1008_v29 = vrot.slane %v1000_v23, %v2749_v37 }
 0x3ca   : > { %v1015_v32 = vrot.slane %v1001_v25, %v2749_v37 }
 0x3cb   : > { %v948_v18 = vcombine.low %v924_v24, %v940_v27  ;;  %v949_v33 = vcombine.high %v924_v24, %v940_v27  ;;  %v964_v34 = vcombine.low %v931_v26, %v947_v28  ;;  %v965_v35 = vcombine.high %v931_v26, %v947_v28 }
 0x3cc   : > { %v1016_v36 = vcombine.low %v992_v30, %v1008_v29  ;;  %v1017_v38 = vcombine.high %v992_v30, %v1008_v29  ;;  %v1032_v39 = vcombine.low %v999_v31, %v1015_v32  ;;  %v1033_v40 = vcombine.high %v999_v31, %v1015_v32 }
 0x3cd   : > { %v956_v43 = vrot.slane %v948_v18, %v2754_v42  ;;  %v963_v44 = vrot.slane %v949_v33, %v2754_v42  ;;  %v972_v45 = vrot.slane %v964_v34, %v2754_v42  ;;  %v979_v46 = vrot.slane %v965_v35, %v2754_v42 }
 0x3ce   : > { %v1024_v47 = vrot.slane %v1016_v36, %v2754_v42  ;;  %v1031_v48 = vrot.slane %v1017_v38, %v2754_v42  ;;  %v1040_v50 = vrot.slane %v1032_v39, %v2754_v42  ;;  %v1047_v51 = vrot.slane %v1033_v40, %v2754_v42 }
 0x3cf   : > { %v1052_v52 = vcombine.low %v956_v43, %v963_v44  ;;  %v1989_v53 = vcombine.high %v956_v43, %v963_v44  ;;  %v1068_v54 = vcombine.low %v972_v45, %v979_v46  ;;  %v1990_v55 = vcombine.high %v972_v45, %v979_v46 }
 0x3d0   : > { %v1120_v56 = vcombine.low %v1024_v47, %v1031_v48  ;;  %v1991_v59 = vcombine.high %v1024_v47, %v1031_v48  ;;  %v1136_v60 = vcombine.low %v1040_v50, %v1047_v51  ;;  %v1992_v61 = vcombine.high %v1040_v50, %v1047_v51 }
 0x3d1   : > { %v2257_v62 = vpop.eup %2256  ;;  %v1059_v63 = vrot.slane %v1052_v52, %v2749_v37  ;;  %v1067_v1 = vrot.slane %v1989_v53, %v2749_v37  ;;  %v1075_v2 = vrot.slane %v1068_v54, %v2749_v37  ;;  %v1083_v3 = vrot.slane %v1990_v55, %v2749_v37 }
 0x3d2   : > { %v2259_v4 = vpop.eup %2258  ;;  %v1127_v5 = vrot.slane %v1120_v56, %v2749_v37  ;;  %v1135_v6 = vrot.slane %v1991_v59, %v2749_v37  ;;  %v1143_v7 = vrot.slane %v1136_v60, %v2749_v37  ;;  %v1151_v8 = vrot.slane %v1992_v61, %v2749_v37 }
 0x3d3   : > { %v1404_v9 = vsel %vm1192_vm3, %v2259_v4, 0.0  ;;  %v1401_v10 = vsel %vm1192_vm3, %v2257_v62, 0.0  ;;  %v1084_v11 = vcombine.low %v1059_v63, %v1067_v1  ;;  %v1100_v41 = vcombine.low %v1075_v2, %v1083_v3 }
 0x3d4   : > { %1405 = vadd.xlane.f32.xlu1 %v1404_v9  ;;  %1402 = vadd.xlane.f32.xlu0 %v1401_v10  ;;  %v1152_v12 = vcombine.low %v1127_v5, %v1135_v6  ;;  %v1168_v13 = vcombine.low %v1143_v7, %v1151_v8  ;;  %v1085_v15 = vcombine.high %v1059_v63, %v1067_v1 }
 0x3d5   : > { %v1092_v49 = vrot.slane %v1084_v11, %v2754_v42  ;;  %v1108_v14 = vrot.slane %v1100_v41, %v2754_v42  ;;  %v1101_v19 = vcombine.high %v1075_v2, %v1083_v3  ;;  %v1153_v20 = vcombine.high %v1127_v5, %v1135_v6 }
 0x3d6   : > { %v1160_v16 = vrot.slane %v1152_v12, %v2754_v42  ;;  %v1176_v17 = vrot.slane %v1168_v13, %v2754_v42  ;;  %v1099_v23 = vrot.slane %v1085_v15, %v2754_v42  ;;  %v1169_v24 = vcombine.high %v1143_v7, %v1151_v8 }
 0x3d7   : > { %v1116_v21 = vcombine.low %v1092_v49, %v1108_v14  ;;  %v1117_v22 = vcombine.high %v1092_v49, %v1108_v14  ;;  %v1115_v27 = vrot.slane %v1101_v19, %v2754_v42  ;;  %v1167_v28 = vrot.slane %v1153_v20, %v2754_v42 }
 0x3d8   : > { %v1184_v25 = vcombine.low %v1160_v16, %v1176_v17  ;;  %v1185_v26 = vcombine.high %v1160_v16, %v1176_v17  ;;  %v1183_v29 = vrot.slane %v1169_v24, %v2754_v42  ;;  %v1413_v35 = vpack.c.bf16 %v2257_v62, %v2257_v62 }
 0x3d9   : > { %v1118_v32 = vcombine.low %v1099_v23, %v1115_v27  ;;  %v1119_v18 = vcombine.high %v1099_v23, %v1115_v27  ;;  %v1414_v36 = vpack.c.bf16 %v2259_v4, %v2259_v4 }
 0x3da   : > { %v1188_v30 = vpack.c.bf16 %v1184_v25, %v1116_v21  ;;  %v1189_v31 = vpack.c.bf16 %v1185_v26, %v1117_v22  ;;  %v1186_v33 = vcombine.low %v1167_v28, %v1183_v29  ;;  %v1187_v34 = vcombine.high %v1167_v28, %v1183_v29 }
 0x3dc   : > { %2083 = vmatpush3.bf16.msra.mxu0 %v1188_v30  ;;  %2089 = vmatpush3.bf16.msra.mxu1 %v1189_v31  ;;  %v1190_v38 = vpack.c.bf16 %v1186_v33, %v1118_v32  ;;  %v1191_v39 = vpack.c.bf16 %v1187_v34, %v1119_v18  ;;  %v2254_v18 = vld [vmem:[%s3006_s3 + $0x10] sm:$0xff]  }
 0x3dd   : > { %2094 = vmatprep.subr.bf16.mxu0 %v2462_v0  ;;  %2100 = vmatprep.subr.bf16.mxu1 %v2462_v0 }
 0x3df   : > { %2085 = vmatmul.mubr.msk.bf16.vlgmr.msra.gmra.mrb[8].mxu0 %vm1192_vm3, %v1413_v35  ;;  %2091 = vmatmul.mubr.msk.bf16.vlgmr.msra.gmra.mrb[16].mxu1 %vm1192_vm3, %v1414_v36 }
 0x3e0   : > { %2095 = vmatpush3.bf16.msra.mxu0 %v1190_v38  ;;  %2101 = vmatpush3.bf16.msra.mxu1 %v1191_v39 }
 0x3e1   : > { %2096 = vmatprep.mubr.msk.bf16.mxu0 %vm2463_vm0, %v2462_v0  ;;  %2102 = vmatprep.mubr.msk.bf16.mxu1 %vm2463_vm0, %v2462_v0 }
 0x3e2   : > { %2106 = vmatprep.subr.bf16.mxu0 %v2462_v0 }
 0x3f7   : > { %v1385_v40 = vpop.xlane.xlu1 %1384  ;;  %v1388_v43 = vpop.xlane.xlu0 %1387 }
 0x3f8   : > { %v1391_v44 = vsub.f32 %v2834_v57, %v1385_v40  ;;  %v1392_v45 = vsub.f32 %v2836_v58, %v1388_v43  ;;  %v2252_v57 = vld [vmem:[%s3006_s3] sm:$0xff]   ;;  %v2253_v58 = vld [vmem:[%s3006_s3 + $0x8] sm:$0xff]  }
 0x3fa   : > { %v1397_v46 = vmul.f32 1.442695, %v1391_v44  ;;  %v1399_v47 = vmul.f32 1.442695, %v1392_v45 }
 0x3fc   : > { %2260 = vpow2.f32 %v1397_v46 }
 0x3fd   : > { %2262 = vpow2.f32 %v1399_v47 }
 0x406   : > { %v2261_v48 = vpop.eup %2260 }
 0x407   : > { %v2263_v50 = vpop.eup %2262  ;;  %v1407_v51 = vsel %vm1192_vm3, %v2261_v48, 0.0  ;;  %v1415_v52 = vpack.c.bf16 %v2261_v48, %v2261_v48  ;;  %v2255_v48 = vld [vmem:[%s3006_s3 + $0x18] sm:$0xff]  }
 0x408   : > { %1408 = vadd.xlane.f32.xlu0 %v1407_v51  ;;  %v1410_v53 = vsel %vm1192_vm3, %v2263_v50, 0.0  ;;  %v1416_v54 = vpack.c.bf16 %v2263_v50, %v2263_v50 }
 0x409   : > { %1411 = vadd.xlane.f32.xlu1 %v1410_v53  ;;  %2097 = vmatmul.mubr.msk.bf16.vlgmr.msra.gmra.mrb[12].mxu0 %vm1192_vm3, %v1415_v52 }
 0x40a   : > { %2103 = vmatmul.mubr.msk.bf16.vlgmr.msra.gmra.mrb[20].mxu1 %vm1192_vm3, %v1416_v54  ;;  %2114 = vmatprep.mubr.msk.bf16.mxu0 %vm2463_vm0, %v2462_v0 }
 0x40b   : > { %2107 = vmatpush3.bf16.msra.mxu0 %v2252_v57 }
 0x40c   : > { %2108 = vmatprep.subr.bf16.mxu0 %v2462_v0 }
 0x40f   : > { %2109 = vmatpush3.bf16.msra.mxu0 %v2253_v58 }
 0x410   : > { %2110 = vmatprep.subr.bf16.mxu0 %v2462_v0 }
 0x413   : > { %2111 = vmatpush3.bf16.msra.mxu0 %v2254_v18 }
 0x414   : > { %2112 = vmatprep.subr.bf16.mxu0 %v2462_v0 }
 0x417   : > { %2113 = vmatpush3.bf16.msra.mxu0 %v2255_v48 }
 0x461   : > { %v1403_v2 = vpop.xlane.xlu0 %1402  ;;  %v1406_v3 = vpop.xlane.xlu1 %1405 }
 0x462   : > { %2264 = vrcp.f32 %v1406_v3  ;;  %v2003_v3 = vld [vmem:[%s3007_s4] ss:$0 sm:$0xff] }
 0x463   : > { %2266 = vrcp.f32 %v1403_v2 }
 0x46c   : > { %v2265_v6 = vpop.eup %2264 }
 0x46d   : > { %v2267_v7 = vpop.eup %2266 }
 0x495   : > { %v1409_v4 = vpop.xlane.xlu0 %1408 }
 0x496   : > { %v1412_v5 = vpop.xlane.xlu1 %1411  ;;  %2268 = vrcp.f32 %v1409_v4 }
 0x497   : > { %2270 = vrcp.f32 %v1412_v5 }
 0x4a0   : > { %v2269_v8 = vpop.eup %2268 }
 0x4a1   : > { %v2271_v10 = vpop.eup %2270 }
 0x4b2   : > { %v1454_v55 = vpop.f32.mrb[8].mxu0  ;;  %v1497_v56 = vpop.f32.mrb[16].mxu1 }
 0x4b3   : > { %v2086_v59 = vpop.f32.mrb[9].mxu0  ;;  %v2092_v60 = vpop.f32.mrb[17].mxu1  ;;  %v1593_v11 = vmul.f32 %v2267_v7, %v1454_v55  ;;  %v1594_v49 = vmul.f32 %v2265_v6, %v1497_v56 }
 0x4b4   : > { %v1457_v61 = vpop.f32.mrb[10].mxu0  ;;  %v1500_v62 = vpop.f32.mrb[18].mxu1 }
 0x4b5   : > { %v2087_v63 = vpop.f32.mrb[11].mxu0  ;;  %v2093_v1 = vpop.f32.mrb[19].mxu1 }
 0x4dc   : > { %v1540_v9 = vpop.f32.mrb[12].mxu0 }
 0x4dd   : > { %v1595_v41 = vmul.f32 %v2269_v8, %v1540_v9  ;;  %v1583_v12 = vpop.f32.mrb[20].mxu1  ;;  %v2098_v13 = vpop.f32.mrb[13].mxu0 }
 0x4de   : > { %v1596_v14 = vmul.f32 %v2271_v10, %v1583_v12  ;;  %v2104_v15 = vpop.f32.mrb[21].mxu1  ;;  %v1543_v16 = vpop.f32.mrb[14].mxu0 }
 0x4df   : > { %v1597_v17 = vcombine.low %v1593_v11, %v1595_v41  ;;  %v1598_v19 = vcombine.high %v1593_v11, %v1595_v41  ;;  %v1586_v20 = vpop.f32.mrb[22].mxu1  ;;  %v2099_v21 = vpop.f32.mrb[15].mxu0 }
 0x4e0   : > { %v1613_v22 = vcombine.low %v1594_v49, %v1596_v14  ;;  %v1614_v23 = vcombine.high %v1594_v49, %v1596_v14  ;;  %v2105_v24 = vpop.f32.mrb[23].mxu1 }
 0x4e1   : > { %v1605_v25 = vrot.slane %v1597_v17, %v2749_v37  ;;  %v1612_v26 = vrot.slane %v1598_v19, %v2749_v37 }
 0x4e2   : > { %v1621_v27 = vrot.slane %v1613_v22, %v2749_v37  ;;  %v1628_v28 = vrot.slane %v1614_v23, %v2749_v37 }
 0x4e4   : > { %v1629_v29 = vcombine.low %v1605_v25, %v1621_v27  ;;  %v1630_v30 = vcombine.high %v1605_v25, %v1621_v27  ;;  %v1645_v31 = vcombine.low %v1612_v26, %v1628_v28  ;;  %v1646_v32 = vcombine.high %v1612_v26, %v1628_v28 }
 0x4e6   : > { %v1637_v33 = vrot.slane %v1629_v29, %v2754_v42  ;;  %v1644_v34 = vrot.slane %v1630_v30, %v2754_v42  ;;  %v1653_v35 = vrot.slane %v1645_v31, %v2754_v42  ;;  %v1660_v36 = vrot.slane %v1646_v32, %v2754_v42 }
 0x4e8   : > { %v1665_v38 = vcombine.low %v1637_v33, %v1644_v34  ;;  %v2001_v39 = vcombine.high %v1637_v33, %v1644_v34  ;;  %v1681_v40 = vcombine.low %v1653_v35, %v1660_v36  ;;  %v2002_v43 = vcombine.high %v1653_v35, %v1660_v36 }
 0x4ea   : > { %v1672_v44 = vrot.slane %v1665_v38, %v2749_v37  ;;  %v1680_v45 = vrot.slane %v2001_v39, %v2749_v37  ;;  %v1688_v46 = vrot.slane %v1681_v40, %v2749_v37  ;;  %v1696_v47 = vrot.slane %v2002_v43, %v2749_v37 }
 0x4ec   : > { %v1698_v50 = vcombine.high %v1672_v44, %v1680_v45  ;;  %v1714_v51 = vcombine.high %v1688_v46, %v1696_v47  ;;  %v1697_v52 = vcombine.low %v1672_v44, %v1680_v45  ;;  %v1713_v53 = vcombine.low %v1688_v46, %v1696_v47 }
 0x4ee   : > { %v1712_v54 = vrot.slane %v1698_v50, %v2754_v42  ;;  %v1728_v0 = vrot.slane %v1714_v51, %v2754_v42  ;;  %v1705_v57 = vrot.slane %v1697_v52, %v2754_v42  ;;  %v1721_v58 = vrot.slane %v1713_v53, %v2754_v42 }
 0x4f0   : > { %v1731_v55 = vcombine.low %v1712_v54, %v1728_v0  ;;  %v1730_v56 = vcombine.high %v1705_v57, %v1721_v58  ;;  %v1732_v37 = vcombine.high %v1712_v54, %v1728_v0  ;;  %v1729_v59 = vcombine.low %v1705_v57, %v1721_v58 }
 0x4f2   : > { %1738 = vrot.lane.b32.xlu1 %v1731_v55, %s2470_s11  ;;  %1734 = vrot.lane.b32.xlu0 %v1730_v56, %s2471_s29  ;;  %s2473_s11 = smov [#allocation7]  }
 0x4f3   : > { %s2334_s29 = sshll.u32 %s2473_s11, 4  ;;  %s2335_s29 = int_to_ptr.vmem [resolvable:$false] %s2334_s29 }
 0x4f4   : > { %p2337_p2 = scmp.lt.s32.totalorder %s2942_s30, %s2335_s29 }
 0x4f6   : > { %1742 = vrot.lane.b32.xlu1 %v1732_v37, %s2472_s15  ;;  %s2336_s15 = scalar_lea.vmem %s2335_s29, 256 }
 0x4f7   : > { %p2338_p5 = scmp.lt.s32.totalorder %s2336_s15, %s2330_s25 }
 0x4f9   : > { %p2339_p8 = por %p2338_p5, %p2337_p2 }
 0x4fb   : > { %p2340_p12 = pnand %p2339_p8, %p2333_p0 }
 0x564   : > { %v1739_v60 = vpop.permute.xlu1 %1738  ;;  %v1735_v61 = vpop.permute.xlu0 %1734 }
 0x565   : > { %v1745_v62 = vsel %vm1192_vm3, %v1729_v59, %v1735_v61 }
 0x566   : > { %v1746_v42 = vsel %vm325_vm1, %v1745_v62, %v1739_v60 }
 0x568   : > { %v1743_v63 = vpop.permute.xlu1 %1742 }
 0x569   : > { %v1748_v1 = vsel %vm1747_vm4, %v1746_v42, %v1743_v63 }
 0x56a   : > { %v1749_v2 = vpack.c.bf16 %v1748_v1, %v1748_v1 }
 0x56c   : > { %2115 = vmatmul.mubr.msk.bf16.vlgmr.msra.gmra.mrb[16].mxu0 %vm397_vm2, %v1749_v2 }
 0x63f   : > { %v1827_v4 = vpop.f32.mrb[16].mxu0 }
 0x640   : > { %v1828_v5 = vadd.f32 %v2003_v3, %v1827_v4  ;;  %v2116_v6 = vpop.f32.mrb[17].mxu0 }
 0x641   : > { %v1830_v7 = vpop.f32.mrb[18].mxu0 }
 0x642   : > { %v2117_v8 = vpop.f32.mrb[19].mxu0  ;;  %1833 = vst.msk [vmem:[%s294_s16] sm:$0xff] %vm325_vm1, %v1828_v5 }
 0x643   : > { %2343 = shalt.err (!%p2340_p12)
}
 0x644   : > { %s2344_s21 = scalar_lea.hbm %s2940_s8, 128  ;;  %s2348_s7 = scalar_lea.hbm %s3048_s6, 512 }
 0x645   : > { %p2345_p1 = scmp.ne.s32.totalorder %s2940_s8, %s2344_s21  ;;  %p2349_p3 = scmp.lt.u32.totalorder %s2940_s8, %s3048_s6 }
 0x646   : > { %p2350_p4 = scmp.lt.u32.totalorder %s2348_s7, %s2344_s21  ;;  %p2352_p9 = scmp.lt.u32.totalorder %s2344_s21, %s2940_s8 }
 0x647   : > { %p2346_p6 = pnand %p2345_p1, %p3049_p11 }
 0x648   : > { %p2351_p7 = por %p2350_p4, %p2349_p3 }
 0x649   : > { %p2347_p10 = pneg %p2346_p6 }
 0x64a   : > { %p2353_p13 = por %p2352_p9, %p2351_p7 }
 0x64c   : > { %p2354_p0 = pnand %p2353_p13, %p2347_p10 }
 0x64e   : > { %2357 = shalt.err (!%p2354_p0)
}
 0x64f   : > { %2124 = dma.vmem_to_hbm [thread:$0]  (%p3049_p11), %s2942_s30, 128, %s2940_s8, %s1835_s24  }
 0x650 PF: > { %s3050_s10 = sld [smem:[#allocation11_spill]]  ;;  %s3051_s16 = sld [smem:[#allocation14_spill]] }
 0x651   : > { %p2141_p2 = scmp.ge.s32.totalorder %s2456_s28, 2 }
 0x656   : > { %s1862_s14 = sand.u32 1, %s3050_s10   ;;  %p3052_p5 = scmp.ne.s32.totalorder %s3051_s16, 0 }
 0x657   : > { %s1863_s5 = scalar_lea.sflag [#allocation4], %s1862_s14 }
 0x658   : > { %p2135_p8 = pnand %p2141_p2, %p3052_p5 }
 0x65a   : > { %2411 = dma.done.wait (!%p2135_p8), %s1863_s5, 128  }
 0x65b   : > { %2413 = vsyncadd (!%p2135_p8), %s1863_s5, 4294967168  ;;  %s22_s28 = sadd.s32 1, %s2456_s28   ;;  %s3053_s24 = sld [smem:[#allocation12_spill]] }
 0x65c   : > { %p19_p12 = scmp.ge.s32.totalorder %s22_s28, 6   ;;  %s3054_s9 = sld [smem:[#allocation15_spill]] }
 0x65d   : > { %s3055_s30 = sld [smem:[#allocation16_spill]]  ;;  %s3056_s18 = smov %s2420_s19 }
 0x65e   : > { %s3057_s19 = smov %s2424_s20  ;;  %s3058_s20 = smov %s2644_s26 }
 0x65f   : > { %s3059_s21 = smov %s2432_s22  ;;  %s3060_s22 = smov %s2436_s23 }
 0x660   : > { %s3061_s23 = smov %s2639_s2  ;;  %s3062_s25 = smov %s2452_s27 }
 0x661   :  { %21 = sbr.rel (!%p19_p12) target bundleno = 13 (0xd), region = 92 }
 0x662   : > { %s3063_s26 = smov %s3054_s9 }
 0x663   : > { %s3064_s27 = smov %s3055_s30 }
 0x668   :  { %1868 = vsyncpa [#allocation3], 1 }
 0x669   :  { %1870 = vsyncpa [#allocation3 + $0x1], 1 }
 0x66a   :  { %1871 = vsyncpa [#allocation6], 1 }
 0x66b   :  { %1872 = vsyncpa [#allocation4], 1 }
 0x66c   :  { %1874 = vsyncpa [#allocation4 + $0x1], 1 }

</bundles_post_ra>
